<compile_context>
chip_gen: v5e
topology: v5e:2x2
jax: 0.10.0
libtpu: 0.0.40
codegen_flags: <defaults>
</compile_context>

<pallas_src>
import functools

import jax
import jax.numpy as jnp
from jax import lax
from jax.experimental import pallas as pl
from jax.experimental.pallas import tpu as pltpu

_LANES = 128


def _dice_partial_kernel(o_ref, m_ref, part_ref, *, n_valid_rows, need_mask):
    """Per-tile partial sums: part[0] = [sum(o*m), sum(o*o), sum(m*m)] per lane."""
    i = pl.program_id(0)

    o = o_ref[...].astype(jnp.float32)   # (TR, 128), fully lane-dense
    m = m_ref[...].astype(jnp.float32)   # (TR, 128)

    if need_mask:
        # Only compiled in when the last grid block extends past the real rows;
        # jnp.where is a select, so garbage (even NaN/inf) in the OOB region is
        # harmless.
        tr = o.shape[0]
        row = lax.broadcasted_iota(jnp.int32, o.shape, 0) + i * tr
        valid = row < n_valid_rows
        o = jnp.where(valid, o, 0.0)
        m = jnp.where(valid, m, 0.0)

    # Reduce over the sublane (row) axis only: pure VPU adds, keeps the store
    # lane-dense, and leaves the cheap cross-lane reduce to the wrapper.
    om = jnp.sum(o * m, axis=0, keepdims=True)   # (1, 128)
    oo = jnp.sum(o * o, axis=0, keepdims=True)   # (1, 128)
    mm = jnp.sum(m * m, axis=0, keepdims=True)   # (1, 128)

    part_ref[...] = jnp.concatenate([om, oo, mm], axis=0).reshape(1, 3, _LANES)


def dice_loss_lv(output, mask, *, tile_rows=4096, eps=1e-8):
    """DICELoss_LV forward. `output` and `mask` must have the same shape."""
    assert output.shape == mask.shape, (output.shape, mask.shape)
    p = int(output.size)

    # Flatten (free for contiguous layouts) and view as (rows, 128):
    # pixels live on the lane axis.
    o_flat = output.reshape(-1)
    m_flat = mask.reshape(-1)

    r = pl.cdiv(p, _LANES)
    p_pad = r * _LANES
    if p_pad != p:
        # Zero padding is exact here (every summed term is a product) and only
        # triggers when the element count is not a multiple of 128.
        o_flat = jnp.pad(o_flat, (0, p_pad - p))
        m_flat = jnp.pad(m_flat, (0, p_pad - p))
    o2 = o_flat.reshape(r, _LANES)
    m2 = m_flat.reshape(r, _LANES)

    if r <= tile_rows:
        tr = r                      # full-dim block: no divisibility constraint
        grid = 1
        need_mask = False
    else:
        tr = tile_rows              # multiple of 8; 2 MiB f32 per input per step
        grid = pl.cdiv(r, tr)
        need_mask = (r % tr) != 0   # mask only if the last block is ragged

    kernel = functools.partial(
        _dice_partial_kernel, n_valid_rows=r, need_mask=need_mask)

    parts = pl.pallas_call(
        kernel,
        out_shape=jax.ShapeDtypeStruct((grid, 3, _LANES), jnp.float32),
        grid_spec=pltpu.PrefetchScalarGridSpec(
            num_scalar_prefetch=0,
            grid=(grid,),
            in_specs=[
                pl.BlockSpec((tr, _LANES), lambda i: (i, 0)),
                pl.BlockSpec((tr, _LANES), lambda i: (i, 0)),
            ],
            out_specs=pl.BlockSpec((1, 3, _LANES), lambda i: (i, 0, 0)),
        ),
        compiler_params=pltpu.CompilerParams(
            # Independent per-block partials -> grid axis shards across the
            # two TensorCores on v7x; no effect (and no harm) on v5e/v6e.
            dimension_semantics=("parallel",),
            # Headroom for double-buffered inputs (8 MiB) + in-body temporaries;
            # well below physical VMEM on all of v5e/v6e/v7x.
            vmem_limit_bytes=48 * 1024 * 1024,
        ),
    )(o2, m2)

    # Tiny epilogue (a few KB): collapse per-lane / per-block partials and form
    # the scalar loss.  TODO(synk): this final combine is a plain XLA reduce in
    # the wrapper rather than a second Pallas pass; it is negligible work.
    sums = jnp.sum(parts, axis=(0, 2))            # (3,)
    inter, den1, den2 = sums[0], sums[1], sums[2]
    dice = 2.0 * (inter + eps) / (den1 + den2 + eps)
    return 1.0 - dice


def _reference(output, mask, eps=1e-8):
    o = output.astype(jnp.float32).reshape(-1)
    m = mask.astype(jnp.float32).reshape(-1)
    inter = jnp.sum(o * m)
    den1 = jnp.sum(o * o)
    den2 = jnp.sum(m * m)
    dice = 2.0 * (inter + eps) / (den1 + den2 + eps)
    return 1.0 - dice


if __name__ == "__main__":
    key = jax.random.PRNGKey(0)
    k1, k2, k3, k4 = jax.random.split(key, 4)

    # Small shape consistent with the module: (N, C, H, W) = (2, 4, 16, 16).
    n, c, h, w = 2, 4, 16, 16
    output = jax.nn.sigmoid(jax.random.normal(k1, (n, c, h, w), dtype=jnp.float32))
    mask = (jax.random.uniform(k2, (n, c, h, w)) > 0.5).astype(jnp.float32)

    loss = dice_loss_lv(output, mask)
    loss = jax.block_until_ready(loss)
    ref = _reference(output, mask)
    assert jnp.allclose(loss, ref, atol=1e-5, rtol=1e-5), (loss, ref)

    # Second tiny case exercising the multi-block grid, lane padding and the
    # ragged-last-tile mask path (tile_rows forced small on purpose).
    out2 = jax.nn.sigmoid(jax.random.normal(k3, (199, 129), dtype=jnp.float32))
    msk2 = (jax.random.uniform(k4, (199, 129)) > 0.5).astype(jnp.float32)
    loss2 = dice_loss_lv(out2, msk2, tile_rows=64)
    loss2 = jax.block_until_ready(loss2)
    ref2 = _reference(out2, msk2)
    assert jnp.allclose(loss2, ref2, atol=1e-5, rtol=1e-5), (loss2, ref2)

    print("KERNEL_OK")
</pallas_src>

<mosaic_0001>
module attributes {stable_mosaic.version = 11 : i64} {
  func.func @_dice_partial_kernel(%arg0: i32, %arg1: memref<16x128xf32, #tpu.memory_space<vmem>>, %arg2: memref<16x128xf32, #tpu.memory_space<vmem>>, %arg3: memref<1x3x128xf32, #tpu.memory_space<vmem>>) attributes {dimension_semantics = [#tpu.dimension_semantics<parallel>], iteration_bounds = array<i64: 1>, scalar_prefetch = 0 : i64, scratch_operands = 0 : i64, tpu.core_type = #tpu.core_type<tc>, window_params = [{transform_indices = @transform_0, window_bounds = array<i64: 16, 128>}, {transform_indices = @transform_1, window_bounds = array<i64: 16, 128>}, {transform_indices = @transform_2, window_bounds = array<i64: 1, 3, 128>}]} {
    %c0 = arith.constant 0 : index
    %c0_0 = arith.constant 0 : index
    %0 = vector.load %arg1[%c0, %c0_0] : memref<16x128xf32, #tpu.memory_space<vmem>>, vector<16x128xf32>
    %c0_1 = arith.constant 0 : index
    %c0_2 = arith.constant 0 : index
    %1 = vector.load %arg2[%c0_1, %c0_2] : memref<16x128xf32, #tpu.memory_space<vmem>>, vector<16x128xf32>
    %2 = arith.mulf %0, %1 : vector<16x128xf32>
    %cst = arith.constant dense<0.000000e+00> : vector<128xf32>
    %3 = vector.multi_reduction <add>, %2, %cst [0] : vector<16x128xf32> to vector<128xf32>
    %4 = vector.shape_cast %3 : vector<128xf32> to vector<1x128xf32>
    %5 = arith.mulf %0, %0 : vector<16x128xf32>
    %cst_3 = arith.constant dense<0.000000e+00> : vector<128xf32>
    %6 = vector.multi_reduction <add>, %5, %cst_3 [0] : vector<16x128xf32> to vector<128xf32>
    %7 = vector.shape_cast %6 : vector<128xf32> to vector<1x128xf32>
    %8 = arith.mulf %1, %1 : vector<16x128xf32>
    %cst_4 = arith.constant dense<0.000000e+00> : vector<128xf32>
    %9 = vector.multi_reduction <add>, %8, %cst_4 [0] : vector<16x128xf32> to vector<128xf32>
    %10 = vector.shape_cast %9 : vector<128xf32> to vector<1x128xf32>
    %11 = tpu.concatenate %4, %7, %10 in 0 : vector<1x128xf32>, vector<1x128xf32>, vector<1x128xf32> -> vector<3x128xf32>
    %12 = vector.shape_cast %11 : vector<3x128xf32> to vector<1x3x128xf32>
    %c0_5 = arith.constant 0 : index
    %c0_6 = arith.constant 0 : index
    %c0_7 = arith.constant 0 : index
    %13 = vector.load %arg3[%c0_5, %c0_6, %c0_7] : memref<1x3x128xf32, #tpu.memory_space<vmem>>, vector<1x3x128xf32>
    tpu.vector_store %arg3[%c0_5, %c0_6, %c0_7], %12 {strides = array<i32>} : memref<1x3x128xf32, #tpu.memory_space<vmem>>, vector<1x3x128xf32>,
    return
  }
  func.func @transform_0(%arg0: i32) -> (i32, i32) {
    %c0_i32 = arith.constant 0 : i32
    %c0_i32_0 = arith.constant 0 : i32
    return %arg0, %c0_i32 : i32, i32
  }
  func.func @transform_1(%arg0: i32) -> (i32, i32) {
    %c0_i32 = arith.constant 0 : i32
    %c0_i32_0 = arith.constant 0 : i32
    return %arg0, %c0_i32 : i32, i32
  }
  func.func @transform_2(%arg0: i32) -> (i32, i32, i32) {
    %c0_i32 = arith.constant 0 : i32
    %c0_i32_0 = arith.constant 0 : i32
    %c0_i32_1 = arith.constant 0 : i32
    return %arg0, %c0_i32, %c0_i32_0 : i32, i32, i32
  }
}

</mosaic_0001>

<bundles_post_ra>
// kernel: tpu_custom_call.1
= control target key start
LH: loop header
LB: loop body
LE: loop exit
PB: predicated region body
PF: predicated region fallthrough
CT: control target
= control target key end

     0   :  { %7 = vsyncpa [#allocation3], 0  ;;  %s169_s0 = inlined_call_operand.hbm [shape: f32[16,128], index: 0, kind: input, shape index: {}]   ;;  %s170_s1 = inlined_call_operand.hbm [shape: f32[16,128], index: 1, kind: input, shape index: {}]   ;;  %s171_s2 = inlined_call_operand.vmem [shape: f32[1,3,128], index: 2, kind: output, shape index: {}]  }
   0x1   :  { %s13_s11 = sshll.u32 %s169_s0, 4  ;;  %s14_s11 = int_to_ptr.hbm [resolvable:$true] %s13_s11 }
   0x2   :  { %8 = vsyncpa [#allocation5], 0  ;;  %s141_s12 = smov [#allocation2]   ;;  %s26_s16 = sshll.u32 %s170_s1, 4  ;;  %s27_s16 = int_to_ptr.hbm [resolvable:$true] %s26_s16 }
   0x3   :  { %s15_s13 = sshll.u32 %s141_s12, 4  ;;  %s142_s17 = smov 128   ;;  %s16_s13 = int_to_ptr.vmem [resolvable:$true] %s15_s13 }
   0x4   :  { %s143_s18 = smov 8   ;;  %s144_s19 = smov [#allocation4]  }
   0x5   :  { %21 = dma.hbm_to_vmem [thread:$0]  %s14_s11, 256, %s16_s13, [#allocation3], %s142_s17, %s142_s17, %s143_s18  }
   0x6   :  { %s28_s20 = sshll.u32 %s144_s19, 4  ;;  %s29_s20 = int_to_ptr.vmem [resolvable:$true] %s28_s20 }
   0x7   :  { %34 = dma.hbm_to_vmem [thread:$0]  %s27_s16, 256, %s29_s20, [#allocation5], %s142_s17, %s142_s17, %s143_s18  }
   0x8   :  { %137 = dma.done.wait [#allocation3], 256  }
   0x9   :  { %138 = vsyncadd [#allocation3], 4294967040 }
   0xa   :  { %139 = dma.done.wait [#allocation5], 256  }
   0xb   :  { %140 = vsyncadd [#allocation5], 4294967040  ;;  %v43_v0 = vld [vmem:[#allocation2] sm:$0xff]  ;;  %v44_v1 = vld [vmem:[#allocation2 + $0x8] sm:$0xff]  ;;  %vm74_vm0 = vcmask 1040384   ;;  %vm76_vm1 = vcmask 1041408  }
   0xc   :  { %v45_v2 = vld [vmem:[#allocation4] sm:$0xff]  ;;  %v46_v3 = vld [vmem:[#allocation4 + $0x8] sm:$0xff]  ;;  %v56_v5 = vmul.f32 %v43_v0, %v43_v0  ;;  %v57_v6 = vmul.f32 %v44_v1, %v44_v1 }
   0xd   :  { %v47_v4 = vmul.f32 %v45_v2, %v43_v0  ;;  %v65_v7 = vmul.f32 %v45_v2, %v45_v2  ;;  %v48_v8 = vmul.f32 %v46_v3, %v44_v1  ;;  %v66_v9 = vmul.f32 %v46_v3, %v46_v3 }
   0xe   :  { %v58_v10 = vadd.f32 %v57_v6, %v56_v5 }
   0xf   :  { %v49_v11 = vadd.f32 %v48_v8, %v47_v4  ;;  %v67_v12 = vadd.f32 %v66_v9, %v65_v7 }
  0x10   :  { %v59_v13 = vrot.slane %v58_v10, 4 }
  0x11   :  { %v50_v14 = vrot.slane %v49_v11, 4  ;;  %v68_v15 = vrot.slane %v67_v12, 4 }
  0x12   :  { %v60_v16 = vadd.f32 %v59_v13, %v58_v10 }
  0x13   :  { %v51_v17 = vadd.f32 %v50_v14, %v49_v11  ;;  %v69_v18 = vadd.f32 %v68_v15, %v67_v12 }
  0x14   :  { %v61_v19 = vrot.slane %v60_v16, 2 }
  0x15   :  { %v52_v20 = vrot.slane %v51_v17, 2  ;;  %v70_v21 = vrot.slane %v69_v18, 2 }
  0x16   :  { %v62_v22 = vadd.f32 %v61_v19, %v60_v16 }
  0x17   :  { %v53_v23 = vadd.f32 %v52_v20, %v51_v17  ;;  %v71_v24 = vadd.f32 %v70_v21, %v69_v18 }
  0x18   :  { %v63_v25 = vrot.slane %v62_v22, 1 }
  0x19   :  { %v54_v26 = vrot.slane %v53_v23, 1  ;;  %v72_v27 = vrot.slane %v71_v24, 1 }
  0x1a   :  { %v64_v28 = vadd.f32 %v63_v25, %v62_v22 }
  0x1b   :  { %v55_v29 = vadd.f32 %v54_v26, %v53_v23  ;;  %v73_v30 = vadd.f32 %v72_v27, %v71_v24 }
  0x1d   :  { %v75_v31 = vsel %vm74_vm0, %v55_v29, %v64_v28 }
  0x1e   :  { %v77_v32 = vsel %vm76_vm1, %v75_v31, %v73_v30 }
  0x1f   :  { %78 = vst [vmem:[%s171_s2] sm:$0x7] %v77_v32 }
  0x20   :  { %83 = vsyncpa [#allocation3], 1 }
  0x21   :  { %84 = vsyncpa [#allocation5], 1 }

</bundles_post_ra>
